<compile_context>
chip_gen: v5e
topology: v5e:2x2
jax: 0.10.0
libtpu: 0.0.40
codegen_flags: <defaults>
</compile_context>

<pallas_src>
import jax
import jax.numpy as jnp
from jax.experimental import pallas as pl
from jax.experimental.pallas import tpu as pltpu


def _round_up(x: int, m: int) -> int:
    return ((x + m - 1) // m) * m


def _length_weighted_bce_kernel(pred_ref, tgt_ref, len_ref, out_ref, acc_ref):
    i = pl.program_id(0)

    @pl.when(i == 0)
    def _init():
        acc_ref[...] = jnp.zeros_like(acc_ref)

    x = pred_ref[...].astype(jnp.float32)    # logits  (TILE_B, C)
    t = tgt_ref[...].astype(jnp.float32)     # targets (TILE_B, C)
    ln = len_ref[...].astype(jnp.float32)    # lengths (TILE_B, 1)

    # Numerically stable BCE-with-logits (torch's formulation):
    #   loss = max(x, 0) - x*t + log(1 + exp(-|x|))
    bce = jnp.maximum(x, 0.0) - x * t + jnp.log1p(jnp.exp(-jnp.abs(x)))

    # Weight by raw lengths; division by max(lengths) is hoisted to wrapper.
    weighted = bce * ln

    # Fold the (TILE_B, C) tile to (8, C) with elementwise vreg adds (VPU);
    # no per-step cross-lane XLU reduce.
    tb, c = weighted.shape
    acc_ref[...] += weighted.reshape(tb // 8, 8, c).sum(axis=0)

    @pl.when(i == pl.num_programs(0) - 1)
    def _finalize():
        out_ref[0, 0] = jnp.sum(acc_ref[...])


def length_weighted_bce_loss(predictions, targets, lengths,
                             *, max_tile_rows=1024, tile_target_bytes=2 * 1024 * 1024):
    """predictions, targets: (B, C); lengths: (B,) or (B, 1). Returns scalar."""
    B, C = predictions.shape
    lengths = jnp.asarray(lengths, jnp.float32).reshape(B, 1)
    max_len = jnp.max(lengths)  # global max, computed once outside the kernel

    # Pick tile rows: ~tile_target_bytes per f32 input tile, multiple of 8.
    rows_by_vmem = max(8, (tile_target_bytes // (4 * C)) // 8 * 8)
    tile_b = min(max_tile_rows, rows_by_vmem, _round_up(B, 8))

    # Pad batch to a multiple of the tile; padded rows get length 0 so their
    # contribution to sum(bce * lengths) is exactly 0.
    Bp = _round_up(B, tile_b)
    if Bp != B:
        pad = Bp - B
        predictions = jnp.pad(predictions, ((0, pad), (0, 0)))
        targets = jnp.pad(targets, ((0, pad), (0, 0)))
        lengths_p = jnp.pad(lengths, ((0, pad), (0, 0)))
    else:
        lengths_p = lengths

    grid = (Bp // tile_b,)
    in_bytes = (predictions.size * predictions.dtype.itemsize
                + targets.size * targets.dtype.itemsize
                + lengths_p.size * 4)

    total = pl.pallas_call(
        _length_weighted_bce_kernel,
        out_shape=jax.ShapeDtypeStruct((1, 1), jnp.float32),
        grid_spec=pltpu.PrefetchScalarGridSpec(
            num_scalar_prefetch=0,
            grid=grid,
            in_specs=[
                pl.BlockSpec((tile_b, C), lambda i: (i, 0)),  # predictions
                pl.BlockSpec((tile_b, C), lambda i: (i, 0)),  # targets
                pl.BlockSpec((tile_b, 1), lambda i: (i, 0)),  # lengths
            ],
            out_specs=pl.BlockSpec(memory_space=pltpu.SMEM),
            scratch_shapes=[pltpu.VMEM((8, C), jnp.float32)],
        ),
        compiler_params=pltpu.CompilerParams(
            dimension_semantics=("arbitrary",)),  # accumulator carried across grid
        cost_estimate=pl.CostEstimate(
            flops=5 * Bp * C,
            transcendentals=2 * Bp * C,
            bytes_accessed=in_bytes + 4),
    )(predictions, targets, lengths_p)

    # Global normalization hoisted out of the kernel:
    #   mean(bce * lengths / max_len) over the ORIGINAL B*C elements.
    return total[0, 0] / (max_len * jnp.float32(B * C))


def _reference(predictions, targets, lengths):
    x = predictions.astype(jnp.float32)
    t = targets.astype(jnp.float32)
    ln = jnp.asarray(lengths, jnp.float32).reshape(x.shape[0], 1)
    bce = jnp.maximum(x, 0.0) - x * t + jnp.log1p(jnp.exp(-jnp.abs(x)))
    w = ln / jnp.max(ln)
    return jnp.mean(bce * w)


if __name__ == "__main__":
    key = jax.random.PRNGKey(0)
    k1, k2, k3, k4, k5, k6 = jax.random.split(key, 6)

    # Primary small case.
    B, C = 8, 128
    predictions = jax.random.normal(k1, (B, C), dtype=jnp.float32)
    targets = (jax.random.uniform(k2, (B, C)) > 0.5).astype(jnp.float32)
    lengths = jax.random.randint(k3, (B,), minval=1, maxval=500).astype(jnp.float32)

    loss = jax.block_until_ready(length_weighted_bce_loss(predictions, targets, lengths))
    ref = _reference(predictions, targets, lengths)
    assert jnp.allclose(loss, ref, rtol=1e-5, atol=1e-5), (loss, ref)

    # Ragged case exercising the batch-padding path (B not multiple of 8,
    # C not multiple of 128 — lane dim uses the full-array block).
    B2, C2 = 6, 96
    p2 = jax.random.normal(k4, (B2, C2), dtype=jnp.float32)
    t2 = (jax.random.uniform(k5, (B2, C2)) > 0.5).astype(jnp.float32)
    l2 = jax.random.randint(k6, (B2,), minval=1, maxval=300).astype(jnp.float32)

    loss2 = jax.block_until_ready(length_weighted_bce_loss(p2, t2, l2))
    ref2 = _reference(p2, t2, l2)
    assert jnp.allclose(loss2, ref2, rtol=1e-5, atol=1e-5), (loss2, ref2)

    print("KERNEL_OK")
</pallas_src>

<mosaic_0001>
module attributes {stable_mosaic.version = 11 : i64} {
  func.func @_length_weighted_bce_kernel(%arg0: i32, %arg1: memref<8x128xf32, #tpu.memory_space<vmem>>, %arg2: memref<8x128xf32, #tpu.memory_space<vmem>>, %arg3: memref<8x1xf32, #tpu.memory_space<vmem>>, %arg4: memref<1x1xf32, #tpu.memory_space<smem>>, %arg5: memref<8x128xf32, #tpu.memory_space<vmem>>) attributes {dimension_semantics = [#tpu.dimension_semantics<arbitrary>], iteration_bounds = array<i64: 1>, scalar_prefetch = 0 : i64, scratch_operands = 1 : i64, tpu.core_type = #tpu.core_type<tc>, window_params = [{transform_indices = @transform_0, window_bounds = array<i64: 8, 128>}, {transform_indices = @transform_1, window_bounds = array<i64: 8, 128>}, {transform_indices = @transform_2, window_bounds = array<i64: 8, 1>}, {transform_indices = @transform_3, window_bounds = array<i64: 1, 1>}]} {
    %c0_i32 = arith.constant 0 : i32
    %0 = arith.cmpi eq, %arg0, %c0_i32 : i32
    %1 = arith.extui %0 : i1 to i32
    %c0_i32_0 = arith.constant 0 : i32
    %2 = arith.cmpi ne, %1, %c0_i32_0 : i32
    scf.if %2 {
      %cst_14 = arith.constant 0.000000e+00 : f32
      %26 = vector.broadcast %cst_14 : f32 to vector<8x128xf32>
      %c0_15 = arith.constant 0 : index
      %c0_16 = arith.constant 0 : index
      %27 = vector.load %arg5[%c0_15, %c0_16] : memref<8x128xf32, #tpu.memory_space<vmem>>, vector<8x128xf32>
      tpu.vector_store %arg5[%c0_15, %c0_16], %26 {strides = array<i32>} : memref<8x128xf32, #tpu.memory_space<vmem>>, vector<8x128xf32>,
    } else {
    }
    %c0 = arith.constant 0 : index
    %c0_1 = arith.constant 0 : index
    %3 = vector.load %arg1[%c0, %c0_1] : memref<8x128xf32, #tpu.memory_space<vmem>>, vector<8x128xf32>
    %c0_2 = arith.constant 0 : index
    %c0_3 = arith.constant 0 : index
    %4 = vector.load %arg2[%c0_2, %c0_3] : memref<8x128xf32, #tpu.memory_space<vmem>>, vector<8x128xf32>
    %c0_4 = arith.constant 0 : index
    %c0_5 = arith.constant 0 : index
    %5 = vector.load %arg3[%c0_4, %c0_5] : memref<8x1xf32, #tpu.memory_space<vmem>>, vector<8x1xf32>
    %cst = arith.constant 0.000000e+00 : f32
    %6 = vector.broadcast %cst : f32 to vector<8x128xf32>
    %7 = arith.maximumf %3, %6 : vector<8x128xf32>
    %8 = arith.mulf %3, %4 : vector<8x128xf32>
    %9 = arith.subf %7, %8 : vector<8x128xf32>
    %10 = math.absf %3 : vector<8x128xf32>
    %cst_6 = arith.constant 0.000000e+00 : f32
    %11 = vector.broadcast %cst_6 : f32 to vector<8x128xf32>
    %12 = arith.subf %11, %10 : vector<8x128xf32>
    %13 = math.exp %12 : vector<8x128xf32>
    %14 = math.log1p %13 : vector<8x128xf32>
    %15 = arith.addf %9, %14 : vector<8x128xf32>
    %16 = vector.broadcast %5 : vector<8x1xf32> to vector<8x128xf32>
    %17 = arith.mulf %15, %16 : vector<8x128xf32>
    %c0_7 = arith.constant 0 : index
    %c0_8 = arith.constant 0 : index
    %18 = vector.load %arg5[%c0_7, %c0_8] : memref<8x128xf32, #tpu.memory_space<vmem>>, vector<8x128xf32>
    %19 = vector.shape_cast %17 : vector<8x128xf32> to vector<1x8x128xf32>
    %cst_9 = arith.constant dense<0.000000e+00> : vector<8x128xf32>
    %20 = vector.multi_reduction <add>, %19, %cst_9 [0] : vector<1x8x128xf32> to vector<8x128xf32>
    %21 = arith.addf %18, %20 : vector<8x128xf32>
    %c0_10 = arith.constant 0 : index
    %c0_11 = arith.constant 0 : index
    %22 = vector.load %arg5[%c0_10, %c0_11] : memref<8x128xf32, #tpu.memory_space<vmem>>, vector<8x128xf32>
    tpu.vector_store %arg5[%c0_10, %c0_11], %21 {strides = array<i32>} : memref<8x128xf32, #tpu.memory_space<vmem>>, vector<8x128xf32>,
    %c0_i32_12 = arith.constant 0 : i32
    %23 = arith.cmpi eq, %arg0, %c0_i32_12 : i32
    %24 = arith.extui %23 : i1 to i32
    %c0_i32_13 = arith.constant 0 : i32
    %25 = arith.cmpi ne, %24, %c0_i32_13 : i32
    scf.if %25 {
      %c0_14 = arith.constant 0 : index
      %c0_15 = arith.constant 0 : index
      %26 = vector.load %arg5[%c0_14, %c0_15] : memref<8x128xf32, #tpu.memory_space<vmem>>, vector<8x128xf32>
      %27 = vector.shape_cast %26 : vector<8x128xf32> to vector<1x8x128xf32>
      %cst_16 = arith.constant dense<0.000000e+00> : vector<1xf32>
      %28 = vector.multi_reduction <add>, %27, %cst_16 [1, 2] : vector<1x8x128xf32> to vector<1xf32>
      %29 = vector.shape_cast %28 : vector<1xf32> to vector<1x1x1xf32>
      %30 = vector.extract %29[0, 0, 0] : f32 from vector<1x1x1xf32>
      %c0_17 = arith.constant 0 : index
      %c0_18 = arith.constant 0 : index
      %31 = memref.load %arg4[%c0_17, %c0_18] : memref<1x1xf32, #tpu.memory_space<smem>>
      memref.store %30, %arg4[%c0_17, %c0_18] : memref<1x1xf32, #tpu.memory_space<smem>>
    } else {
    }
    return
  }
  func.func @transform_0(%arg0: i32) -> (i32, i32) {
    %c0_i32 = arith.constant 0 : i32
    %c0_i32_0 = arith.constant 0 : i32
    return %arg0, %c0_i32 : i32, i32
  }
  func.func @transform_1(%arg0: i32) -> (i32, i32) {
    %c0_i32 = arith.constant 0 : i32
    %c0_i32_0 = arith.constant 0 : i32
    return %arg0, %c0_i32 : i32, i32
  }
  func.func @transform_2(%arg0: i32) -> (i32, i32) {
    %c0_i32 = arith.constant 0 : i32
    %c0_i32_0 = arith.constant 0 : i32
    return %arg0, %c0_i32 : i32, i32
  }
  func.func @transform_3(%arg0: i32) -> (i32, i32) {
    %c0_i32 = arith.constant 0 : i32
    %c0_i32_0 = arith.constant 0 : i32
    %c0_i32_1 = arith.constant 0 : i32
    return %c0_i32, %c0_i32_0 : i32, i32
  }
}

</mosaic_0001>

<bundles_post_ra>
// kernel: tpu_custom_call.1
= control target key start
LH: loop header
LB: loop body
LE: loop exit
PB: predicated region body
PF: predicated region fallthrough
CT: control target
= control target key end

     0   :  { %8 = vsyncpa [#allocation4], 0  ;;  %s180_s0 = inlined_call_operand.vmem [shape: f32[8,128], index: 0, kind: input, shape index: {}]   ;;  %s181_s1 = inlined_call_operand.hbm [shape: f32[8,128], index: 1, kind: input, shape index: {}]   ;;  %s182_s2 = inlined_call_operand.vmem [shape: f32[8,1], index: 2, kind: input, shape index: {}]   ;;  %s183_s3 = inlined_call_operand.hbm [shape: f32[1,1], index: 3, kind: output, shape index: {}]  }
   0x1   :  { %9 = vsyncpa [#allocation5], 0  ;;  %s17_s14 = sshll.u32 %s181_s1, 4  ;;  %s145_s15 = smov [#allocation3]   ;;  %s18_s14 = int_to_ptr.hbm [resolvable:$true] %s17_s14 }
   0x2   :  { %s19_s16 = sshll.u32 %s145_s15, 4  ;;  %s20_s16 = int_to_ptr.vmem [resolvable:$true] %s19_s16 }
   0x3   :  { %22 = dma.hbm_to_vmem [thread:$0]  %s18_s14, 128, %s20_s16, [#allocation4]  }
   0x4   :  { %141 = dma.done.wait [#allocation4], 128  }
   0x5   :  { %142 = vsyncadd [#allocation4], 4294967168  ;;  %v146_v0 = vmov 0   ;;  %v36_v1 = vld [vmem:[%s182_s2] sm:$0xff]  ;;  %s84_s2 = sshll.u32 %s183_s3, 4  ;;  %s147_s22 = smov [#allocation6]   ;;  %s85_s2 = int_to_ptr.hbm [resolvable:$true] %s84_s2 }
   0x6   :  { %100 = vset.pattern.permute.xlu0 %v146_v0  ;;  %v34_v2 = vld [vmem:[%s180_s0] sm:$0xff] }
   0x7   :  { %56 = vperm.xlu0 %100, %v36_v1   ;;  %v40_v3 = vand.u32 2147483647, %v34_v2  ;;  %v35_v9 = vld [vmem:[#allocation3] sm:$0xff]  ;;  %v37_v13 = vmax.f32 %v34_v2, 0.0 }
   0x8   :  { %v38_v14 = vmul.f32 %v35_v9, %v34_v2 }
   0x9   :  { %v41_v4 = vsub.f32 0.0, %v40_v3 }
   0xa   :  { %v39_v17 = vsub.f32 %v37_v13, %v38_v14 }
   0xb   :  { %v42_v5 = vmul.f32 1.442695, %v41_v4 }
   0xd   :  { %101 = vpow2.f32 %v42_v5 }
  0x13   :  { %v102_v6 = vpop.eup %101 }
  0x14   :  { %v44_v7 = vadd.f32 1.0, %v102_v6  ;;  %v47_v8 = vmul.f32 -0.5, %v102_v6  ;;  %v50_v12 = vand.u32 2147483647, %v102_v6 }
  0x16   :  { %103 = vlog2.f32 %v44_v7  ;;  %v48_v10 = vadd.f32 1.0, %v47_v8  ;;  %vm51_vm0 = vcmp.lt.f32.partialorder %v50_v12, 0.0004427343 }
  0x18   :  { %v49_v16 = vmul.f32 %v102_v6, %v48_v10 }
  0x1c   :  { %v104_v11 = vpop.eup %103 }
  0x1d   :  { %v46_v15 = vmul.f32 0.6931472, %v104_v11 }
  0x1f   :  { %v52_v18 = vsel %vm51_vm0, %v49_v16, %v46_v15 }
  0x20   :  { %v53_v19 = vadd.f32 %v52_v18, %v39_v17 }
  0x79   :  { %v57_v20 = vpop.permute.xlu0 %56 }
  0x7a   :  { %v59_v21 = vmul.f32 %v57_v20, %v53_v19 }
  0x7c   :  { %68 = vadd.xlane.f32.xlu0 %v59_v21 }
  0xef   :  { %v69_v22 = vpop.xlane.xlu0 %68 }
  0xf0   :  { %v70_v23 = vrot.slane %v69_v22, 4 }
  0xf2   :  { %v71_v24 = vadd.f32 %v70_v23, %v69_v22 }
  0xf4   :  { %v72_v25 = vrot.slane %v71_v24, 2 }
  0xf6   :  { %v73_v26 = vadd.f32 %v72_v25, %v71_v24 }
  0xf8   :  { %v74_v27 = vrot.slane %v73_v26, 1 }
  0xfa   :  { %v75_v28 = vadd.f32 %v74_v27, %v73_v26 }
  0xfc   :  { %95 = vpush %v75_v28 }
 0x12d   :  { %s96_s21 = spop %95 }
 0x12e   :  { %78 = sst [smem:[#allocation6]] %s96_s21 }
 0x12f   :  { %87 = dma.smem_to_hbm %s147_s22, 16, %s85_s2, [#allocation5]  }
 0x130   :  { %143 = dma.done.wait [#allocation5], 16  }
 0x131   :  { %144 = vsyncadd [#allocation5], 4294967280 }
 0x132   :  { %92 = sfence }
 0x133   :  { %93 = vsyncpa [#allocation4], 1 }
 0x134   :  { %94 = vsyncpa [#allocation5], 1 }

</bundles_post_ra>
